<compile_context>
chip_gen: v7x
topology: tpu7x:2x2x1
jax: 0.10.0
libtpu: 0.0.40
codegen_flags: <defaults>
</compile_context>

<pallas_src>
import math
import numpy as np
import jax
import jax.numpy as jnp
from jax.experimental import pallas as pl
from jax.experimental.pallas import tpu as pltpu

# ----------------------- configuration (small, toy-sized) ---------------------
N_BATCH   = 2
Z_DIM     = 32               # NoiseDimension
C_DIM     = 0                # c_dim == 0 -> no condition EmbeddingLayer
WIDTHS    = [16, 8]          # WidthPerStage
CARD      = [2, 2]           # CardinalityPerStage (groups of the 3x3 conv)
BLOCKS    = [1, 1]           # BlocksPerStage
EXPANSION = 2                # ExpansionFactor
IMG_RES   = 4 * 2 ** (len(WIDTHS) - 1)   # img_resolution = 8
HW        = IMG_RES * IMG_RES

LRELU_SLOPE = 0.2
ACT_GAIN    = math.sqrt(2.0)                 # BiasedActivation.Gain
VSP         = float(sum(BLOCKS))             # VarianceScalingParameter
MSR_GAIN    = ACT_GAIN * VSP ** (-0.25)      # MSR init gain of block convs 1 & 2

PIX_LANES = 128                                        # physical lane width of activations
SPP       = max(1, min(N_BATCH, PIX_LANES // HW))      # samples packed per grid program
assert N_BATCH % SPP == 0
assert SPP * HW <= PIX_LANES and SPP * 16 <= PIX_LANES


# --------------------- host-side structural constants -------------------------
def _up1d(d):
    """1-D stencil of upfirdn2d.upsample2d([1,2,1], up=2) as a (2d, d) matrix.
    TODO(synk): cross-check phase / gain convention against the upfirdn2d reference."""
    u = np.zeros((2 * d, d), np.float32)
    for p in range(d):
        u[2 * p + 1, p] = 1.0
        u[2 * p, p] = 0.5
        if p >= 1:
            u[2 * p, p - 1] = 0.5
    return u


def _conv_masks(res):
    """(9, res*res) border masks (per sample) for a 3x3 conv with padding=1."""
    hh, ww = np.meshgrid(np.arange(res), np.arange(res), indexing="ij")
    m = np.zeros((9, res * res), np.float32)
    for kh in range(3):
        for kw in range(3):
            ok = ((hh + kh - 1 >= 0) & (hh + kh - 1 < res) &
                  (ww + kw - 1 >= 0) & (ww + kw - 1 < res))
            m[kh * 3 + kw] = ok.reshape(-1).astype(np.float32)
    return m


class _Slab:
    """Packs many small 2-D params into one (rows, width) array with static offsets."""
    def __init__(self, width, row_align):
        self.width, self.align = width, row_align
        self.parts, self.off, self.rows = [], {}, 0

    def add(self, name, arr):
        arr = np.asarray(arr, np.float32)
        r, c = arr.shape
        assert c <= self.width, (name, arr.shape)
        rp = r + (-r) % self.align
        buf = np.zeros((rp, self.width), np.float32)
        buf[:r, :c] = arr
        self.off[name] = (self.rows, r, c)
        self.parts.append(buf)
        self.rows += rp

    def finish(self, dtype):
        return jnp.asarray(np.concatenate(self.parts, axis=0)).astype(dtype)


# ----------------------------- init + pack params -----------------------------
def init_and_pack(seed=0):
    rng = np.random.default_rng(seed)
    emax = max(w * EXPANSION for w in WIDTHS)
    wwidth = (9 * emax + 127) // 128 * 128
    wslab = _Slab(wwidth, row_align=16)      # bf16 slab (MXU operands)
    fslab = _Slab(PIX_LANES, row_align=8)    # f32 slab (basis / biases / masks)

    c0 = WIDTHS[0]
    # GenerativeBasis: Linear(Z -> C0, MSR init) and learned Basis (C0, 4, 4)
    wslab.add("lin", rng.standard_normal((c0, Z_DIM)) / math.sqrt(Z_DIM))
    basis = rng.standard_normal((c0, 16)).astype(np.float32)
    basis_t = np.zeros((c0, PIX_LANES), np.float32)
    basis_t[:, :SPP * 16] = np.tile(basis, (1, SPP))
    fslab.add("basis", basis_t)
    # one-hot pixel replication: (C0, SPP) -> (C0, SPP*16), zero beyond valid pixels
    rep = np.zeros((SPP, PIX_LANES), np.float32)
    for j in range(SPP):
        rep[j, j * 16:(j + 1) * 16] = 1.0
    wslab.add("rep", rep)

    stages = []
    for s, (c, g, nb) in enumerate(zip(WIDTHS, CARD, BLOCKS)):
        e, res = c * EXPANSION, 4 * 2 ** s
        cg = e // g
        shifts = tuple((kh - 1) * res + (kw - 1) for kh in range(3) for kw in range(3))
        mask = np.zeros((9, PIX_LANES), np.float32)
        mask[:, :SPP * res * res] = np.tile(_conv_masks(res), (1, SPP))
        fslab.add(f"mask{s}", mask)
        if s > 0:
            cin = WIDTHS[s - 1]
            wslab.add(f"trans{s}", rng.standard_normal((c, cin)) / math.sqrt(cin))
            u = np.kron(_up1d(res // 2), _up1d(res // 2))            # per-sample (m, m/4)
            wslab.add(f"up{s}", np.kron(np.eye(SPP, dtype=np.float32), u.T))
        for b in range(nb):
            wslab.add(f"w1_{s}_{b}",
                      rng.standard_normal((e, c)) * (MSR_GAIN / math.sqrt(c)))
            fslab.add(f"b1_{s}_{b}", 0.1 * rng.standard_normal((e, 1)))
            # Grouped 3x3 conv packed channel-major over the 9 taps: (E, 9E).
            # For real torch weights W of shape (E, E/g, 3, 3):
            #   w2[co, (kh*3+kw)*E + group(co)*cg + ci] = W[co, ci, kh, kw]
            wt = rng.standard_normal((g, cg, cg, 3, 3)) * (MSR_GAIN / math.sqrt(9 * cg))
            w2 = np.zeros((e, 9 * e), np.float32)
            for gi in range(g):
                for col in range(cg):
                    for cil in range(cg):
                        for t in range(9):
                            w2[gi * cg + col, t * e + gi * cg + cil] = \
                                wt[gi, col, cil, t // 3, t % 3]
            wslab.add(f"w2_{s}_{b}", w2 * ACT_GAIN)     # fold BiasedActivation gain
            fslab.add(f"b2_{s}_{b}", 0.1 * rng.standard_normal((e, 1)))
            # TODO(synk): R3GAN zero-inits this 1x1 conv (ActivationGain=0); small
            # random init here so the residual path is numerically exercised.
            wslab.add(f"w3_{s}_{b}",
                      rng.standard_normal((c, e)) * (MSR_GAIN / math.sqrt(e)) * ACT_GAIN)
        stages.append(dict(nb=nb, shifts=shifts))
    wslab.add("agg", rng.standard_normal((3, WIDTHS[-1])) / math.sqrt(WIDTHS[-1]))

    meta = dict(stages=stages, w_off=wslab.off, f_off=fslab.off)
    return wslab.finish(jnp.bfloat16), fslab.finish(jnp.float32), meta


# --------------------------------- kernel -------------------------------------
def _lrelu(v):
    return jnp.maximum(v, LRELU_SLOPE * v)


def _make_kernel(meta):
    stages, w_off, f_off = meta["stages"], meta["w_off"], meta["f_off"]

    def kernel(z_ref, w_ref, f_ref, out_ref):
        def wld(name):                          # bf16 MXU operand
            o, r, c = w_off[name]
            return w_ref[o:o + r, 0:c]

        def fld(name):                          # f32 VPU operand
            o, r, c = f_off[name]
            return f_ref[o:o + r, 0:c]

        # --- stage-0 transition: GenerativeBasis = Basis * Linear(z) ----------
        zb = z_ref[0].astype(jnp.bfloat16)                                   # (Z, SPP)
        lin = jnp.dot(wld("lin"), zb, preferred_element_type=jnp.float32)    # (C0, SPP)
        lin = jnp.dot(lin.astype(jnp.bfloat16), wld("rep"),
                      preferred_element_type=jnp.float32)                    # (C0, 128)
        x = fld("basis") * lin                                               # (C0, 128)

        for s, st in enumerate(stages):
            if s > 0:
                # UpsampleLayer: 1x1 conv, then [1,2,1] interpolative 2x upsample.
                x = jnp.dot(wld(f"trans{s}"), x.astype(jnp.bfloat16),
                            preferred_element_type=jnp.float32)
                valid = w_off[f"up{s}"][1]                                   # = SPP * prev_HW
                x = jnp.dot(x[:, 0:valid].astype(jnp.bfloat16), wld(f"up{s}"),
                            preferred_element_type=jnp.float32)              # (C, 128)
            mo = f_off[f"mask{s}"][0]
            masks = [f_ref[mo + t:mo + t + 1, :] for t in range(9)]          # (1, 128)
            for b in range(st["nb"]):
                # 1x1 conv -> biased lrelu (activation gain folded into w2)
                y = jnp.dot(wld(f"w1_{s}_{b}"), x.astype(jnp.bfloat16),
                            preferred_element_type=jnp.float32)
                y = _lrelu(y + fld(f"b1_{s}_{b}"))
                # grouped 3x3 conv: 9 XLU pixel rolls + border masks, then one
                # (E, 9E) @ (9E, 128) MXU matmul (taps stacked along K).
                parts = []
                for t, sft in enumerate(st["shifts"]):
                    if sft == 0:
                        parts.append(y)
                    else:
                        parts.append(pltpu.roll(y, (-sft) % PIX_LANES, axis=1)
                                     * masks[t])
                y_all = jnp.concatenate(parts, axis=0).astype(jnp.bfloat16)
                v = jnp.dot(wld(f"w2_{s}_{b}"), y_all,
                            preferred_element_type=jnp.float32)
                v = _lrelu(v + fld(f"b2_{s}_{b}"))
                # 1x1 conv back to C (activation gain folded into w3) + skip add
                x = x + jnp.dot(wld(f"w3_{s}_{b}"), v.astype(jnp.bfloat16),
                                preferred_element_type=jnp.float32)

        # AggregationLayer (1x1 conv to RGB); single lane-dense (3, 128) store.
        out_ref[...] = jnp.dot(wld("agg"), x.astype(jnp.bfloat16),
                               preferred_element_type=jnp.float32)
    return kernel


# ------------------------------- forward wrapper ------------------------------
def make_generator_forward(wslab, fslab, meta):
    kernel = _make_kernel(meta)
    n_prog = N_BATCH // SPP

    @jax.jit
    def forward(z, c=None):
        # c (condition) is ignored: c_dim == 0 -> the torch module builds no EmbeddingLayer.
        zt = jnp.transpose(z.reshape(n_prog, SPP, Z_DIM), (0, 2, 1))     # (NP, Z, SPP)
        out = pl.pallas_call(
            kernel,
            out_shape=jax.ShapeDtypeStruct((3, N_BATCH * HW), jnp.float32),
            grid=(n_prog,),
            in_specs=[
                pl.BlockSpec((1, Z_DIM, SPP), lambda i: (i, 0, 0)),
                pl.BlockSpec(wslab.shape, lambda i: (0, 0)),             # resident weights
                pl.BlockSpec(fslab.shape, lambda i: (0, 0)),             # resident consts
            ],
            out_specs=pl.BlockSpec((3, SPP * HW), lambda i: (0, i)),
            compiler_params=pltpu.CompilerParams(
                dimension_semantics=("parallel",)),
        )(zt, wslab, fslab)
        # tiny channel-major -> NCHW rearrangement stays in the XLA wrapper
        return jnp.transpose(out.reshape(3, N_BATCH, IMG_RES, IMG_RES), (1, 0, 2, 3))
    return forward


if __name__ == "__main__":
    wslab, fslab, meta = init_and_pack(seed=0)
    forward = make_generator_forward(wslab, fslab, meta)

    key = jax.random.PRNGKey(0)
    z = jax.random.normal(key, (N_BATCH, Z_DIM), jnp.float32)      # noise input
    c = jnp.zeros((N_BATCH, C_DIM), jnp.float32)                   # c_dim == 0

    out = jax.block_until_ready(forward(z, c))
    assert out.shape == (N_BATCH, 3, IMG_RES, IMG_RES), out.shape
    assert out.dtype == jnp.float32
    assert bool(jnp.all(jnp.isfinite(out)))
    print("KERNEL_OK")
</pallas_src>

<mosaic_0001>
module attributes {stable_mosaic.version = 11 : i64} {
  func.func @kernel(%arg0: i32, %arg1: memref<1x32x2xf32, #tpu.memory_space<vmem>>, %arg2: memref<224x384xbf16, #tpu.memory_space<vmem>>, %arg3: memref<144x128xf32, #tpu.memory_space<vmem>>, %arg4: memref<3x128xf32, #tpu.memory_space<vmem>>) attributes {dimension_semantics = [#tpu.dimension_semantics<parallel>], iteration_bounds = array<i64: 1>, scalar_prefetch = 0 : i64, scratch_operands = 0 : i64, tpu.core_type = #tpu.core_type<tc>, window_params = [{transform_indices = @transform_0, window_bounds = array<i64: 1, 32, 2>}, {pipeline_mode = #tpu.pipeline_mode<synchronous>, transform_indices = @transform_1, window_bounds = array<i64: 224, 384>}, {pipeline_mode = #tpu.pipeline_mode<synchronous>, transform_indices = @transform_2, window_bounds = array<i64: 144, 128>}, {transform_indices = @transform_3, window_bounds = array<i64: 3, 128>}]} {
    %c0 = arith.constant 0 : index
    %c0_0 = arith.constant 0 : index
    %c0_1 = arith.constant 0 : index
    %0 = vector.load %arg1[%c0, %c0_0, %c0_1] : memref<1x32x2xf32, #tpu.memory_space<vmem>>, vector<1x32x2xf32>
    %1 = vector.shape_cast %0 : vector<1x32x2xf32> to vector<32x2xf32>
    %2 = arith.truncf %1 : vector<32x2xf32> to vector<32x2xbf16>
    %c0_2 = arith.constant 0 : index
    %c0_3 = arith.constant 0 : index
    %3 = vector.load %arg2[%c0_2, %c0_3] : memref<224x384xbf16, #tpu.memory_space<vmem>>, vector<16x32xbf16>
    %cst = arith.constant dense<0.000000e+00> : vector<16x2xf32>
    %4 = tpu.matmul %3, %2, %cst {dimension_numbers = #tpu.dot_dimension_numbers<[1], [0], [0], [1], [0, 0, 1, 1], [], []>} : vector<16x32xbf16>, vector<32x2xbf16>, vector<16x2xf32> -> vector<16x2xf32>
    %5 = arith.truncf %4 : vector<16x2xf32> to vector<16x2xbf16>
    %c16 = arith.constant 16 : index
    %c0_4 = arith.constant 0 : index
    %6 = vector.load %arg2[%c16, %c0_4] : memref<224x384xbf16, #tpu.memory_space<vmem>>, vector<2x128xbf16>
    %cst_5 = arith.constant dense<0.000000e+00> : vector<16x128xf32>
    %7 = tpu.matmul %5, %6, %cst_5 {dimension_numbers = #tpu.dot_dimension_numbers<[1], [0], [0], [1], [0, 0, 1, 1], [], []>} : vector<16x2xbf16>, vector<2x128xbf16>, vector<16x128xf32> -> vector<16x128xf32>
    %c0_6 = arith.constant 0 : index
    %c0_7 = arith.constant 0 : index
    %8 = vector.load %arg3[%c0_6, %c0_7] : memref<144x128xf32, #tpu.memory_space<vmem>>, vector<16x128xf32>
    %9 = arith.mulf %8, %7 : vector<16x128xf32>
    %c16_8 = arith.constant 16 : index
    %c0_9 = arith.constant 0 : index
    %10 = vector.load %arg3[%c16_8, %c0_9] : memref<144x128xf32, #tpu.memory_space<vmem>>, vector<1x128xf32>
    %c17 = arith.constant 17 : index
    %c0_10 = arith.constant 0 : index
    %11 = vector.load %arg3[%c17, %c0_10] : memref<144x128xf32, #tpu.memory_space<vmem>>, vector<1x128xf32>
    %c18 = arith.constant 18 : index
    %c0_11 = arith.constant 0 : index
    %12 = vector.load %arg3[%c18, %c0_11] : memref<144x128xf32, #tpu.memory_space<vmem>>, vector<1x128xf32>
    %c19 = arith.constant 19 : index
    %c0_12 = arith.constant 0 : index
    %13 = vector.load %arg3[%c19, %c0_12] : memref<144x128xf32, #tpu.memory_space<vmem>>, vector<1x128xf32>
    %c21 = arith.constant 21 : index
    %c0_13 = arith.constant 0 : index
    %14 = vector.load %arg3[%c21, %c0_13] : memref<144x128xf32, #tpu.memory_space<vmem>>, vector<1x128xf32>
    %c22 = arith.constant 22 : index
    %c0_14 = arith.constant 0 : index
    %15 = vector.load %arg3[%c22, %c0_14] : memref<144x128xf32, #tpu.memory_space<vmem>>, vector<1x128xf32>
    %c23 = arith.constant 23 : index
    %c0_15 = arith.constant 0 : index
    %16 = vector.load %arg3[%c23, %c0_15] : memref<144x128xf32, #tpu.memory_space<vmem>>, vector<1x128xf32>
    %c24 = arith.constant 24 : index
    %c0_16 = arith.constant 0 : index
    %17 = vector.load %arg3[%c24, %c0_16] : memref<144x128xf32, #tpu.memory_space<vmem>>, vector<1x128xf32>
    %c32 = arith.constant 32 : index
    %c0_17 = arith.constant 0 : index
    %18 = vector.load %arg2[%c32, %c0_17] : memref<224x384xbf16, #tpu.memory_space<vmem>>, vector<32x16xbf16>
    %19 = arith.truncf %9 : vector<16x128xf32> to vector<16x128xbf16>
    %cst_18 = arith.constant dense<0.000000e+00> : vector<32x128xf32>
    %20 = tpu.matmul %18, %19, %cst_18 {dimension_numbers = #tpu.dot_dimension_numbers<[1], [0], [0], [1], [0, 0, 1, 1], [], []>} : vector<32x16xbf16>, vector<16x128xbf16>, vector<32x128xf32> -> vector<32x128xf32>
    %c32_19 = arith.constant 32 : index
    %c0_20 = arith.constant 0 : index
    %21 = vector.load %arg3[%c32_19, %c0_20] : memref<144x128xf32, #tpu.memory_space<vmem>>, vector<32x1xf32>
    %22 = vector.broadcast %21 : vector<32x1xf32> to vector<32x128xf32>
    %23 = arith.addf %20, %22 : vector<32x128xf32>
    %cst_21 = arith.constant 2.000000e-01 : f32
    %24 = vector.broadcast %cst_21 : f32 to vector<32x128xf32>
    %25 = arith.mulf %24, %23 : vector<32x128xf32>
    %26 = arith.maximumf %23, %25 : vector<32x128xf32>
    %c5_i32 = arith.constant 5 : i32
    %27 = tpu.dynamic_rotate %26 by %c5_i32 dim 1 : vector<32x128xf32>, i32 -> vector<32x128xf32>
    %28 = vector.broadcast %10 : vector<1x128xf32> to vector<32x128xf32>
    %29 = arith.mulf %27, %28 : vector<32x128xf32>
    %c4_i32 = arith.constant 4 : i32
    %30 = tpu.dynamic_rotate %26 by %c4_i32 dim 1 : vector<32x128xf32>, i32 -> vector<32x128xf32>
    %31 = vector.broadcast %11 : vector<1x128xf32> to vector<32x128xf32>
    %32 = arith.mulf %30, %31 : vector<32x128xf32>
    %c3_i32 = arith.constant 3 : i32
    %33 = tpu.dynamic_rotate %26 by %c3_i32 dim 1 : vector<32x128xf32>, i32 -> vector<32x128xf32>
    %34 = vector.broadcast %12 : vector<1x128xf32> to vector<32x128xf32>
    %35 = arith.mulf %33, %34 : vector<32x128xf32>
    %c1_i32 = arith.constant 1 : i32
    %36 = tpu.dynamic_rotate %26 by %c1_i32 dim 1 : vector<32x128xf32>, i32 -> vector<32x128xf32>
    %37 = vector.broadcast %13 : vector<1x128xf32> to vector<32x128xf32>
    %38 = arith.mulf %36, %37 : vector<32x128xf32>
    %c127_i32 = arith.constant 127 : i32
    %39 = tpu.dynamic_rotate %26 by %c127_i32 dim 1 : vector<32x128xf32>, i32 -> vector<32x128xf32>
    %40 = vector.broadcast %14 : vector<1x128xf32> to vector<32x128xf32>
    %41 = arith.mulf %39, %40 : vector<32x128xf32>
    %c125_i32 = arith.constant 125 : i32
    %42 = tpu.dynamic_rotate %26 by %c125_i32 dim 1 : vector<32x128xf32>, i32 -> vector<32x128xf32>
    %43 = vector.broadcast %15 : vector<1x128xf32> to vector<32x128xf32>
    %44 = arith.mulf %42, %43 : vector<32x128xf32>
    %c124_i32 = arith.constant 124 : i32
    %45 = tpu.dynamic_rotate %26 by %c124_i32 dim 1 : vector<32x128xf32>, i32 -> vector<32x128xf32>
    %46 = vector.broadcast %16 : vector<1x128xf32> to vector<32x128xf32>
    %47 = arith.mulf %45, %46 : vector<32x128xf32>
    %c123_i32 = arith.constant 123 : i32
    %48 = tpu.dynamic_rotate %26 by %c123_i32 dim 1 : vector<32x128xf32>, i32 -> vector<32x128xf32>
    %49 = vector.broadcast %17 : vector<1x128xf32> to vector<32x128xf32>
    %50 = arith.mulf %48, %49 : vector<32x128xf32>
    %51 = tpu.concatenate %29, %32, %35, %38, %26, %41, %44, %47, %50 in 0 : vector<32x128xf32>, vector<32x128xf32>, vector<32x128xf32>, vector<32x128xf32>, vector<32x128xf32>, vector<32x128xf32>, vector<32x128xf32>, vector<32x128xf32>, vector<32x128xf32> -> vector<288x128xf32>
    %52 = arith.truncf %51 : vector<288x128xf32> to vector<288x128xbf16>
    %c64 = arith.constant 64 : index
    %c0_22 = arith.constant 0 : index
    %53 = vector.load %arg2[%c64, %c0_22] : memref<224x384xbf16, #tpu.memory_space<vmem>>, vector<32x288xbf16>
    %cst_23 = arith.constant dense<0.000000e+00> : vector<32x128xf32>
    %54 = tpu.matmul %53, %52, %cst_23 {dimension_numbers = #tpu.dot_dimension_numbers<[1], [0], [0], [1], [0, 0, 1, 1], [], []>} : vector<32x288xbf16>, vector<288x128xbf16>, vector<32x128xf32> -> vector<32x128xf32>
    %c64_24 = arith.constant 64 : index
    %c0_25 = arith.constant 0 : index
    %55 = vector.load %arg3[%c64_24, %c0_25] : memref<144x128xf32, #tpu.memory_space<vmem>>, vector<32x1xf32>
    %56 = vector.broadcast %55 : vector<32x1xf32> to vector<32x128xf32>
    %57 = arith.addf %54, %56 : vector<32x128xf32>
    %cst_26 = arith.constant 2.000000e-01 : f32
    %58 = vector.broadcast %cst_26 : f32 to vector<32x128xf32>
    %59 = arith.mulf %58, %57 : vector<32x128xf32>
    %60 = arith.maximumf %57, %59 : vector<32x128xf32>
    %c96 = arith.constant 96 : index
    %c0_27 = arith.constant 0 : index
    %61 = vector.load %arg2[%c96, %c0_27] : memref<224x384xbf16, #tpu.memory_space<vmem>>, vector<16x32xbf16>
    %62 = arith.truncf %60 : vector<32x128xf32> to vector<32x128xbf16>
    %cst_28 = arith.constant dense<0.000000e+00> : vector<16x128xf32>
    %63 = tpu.matmul %61, %62, %cst_28 {dimension_numbers = #tpu.dot_dimension_numbers<[1], [0], [0], [1], [0, 0, 1, 1], [], []>} : vector<16x32xbf16>, vector<32x128xbf16>, vector<16x128xf32> -> vector<16x128xf32>
    %64 = arith.addf %9, %63 : vector<16x128xf32>
    %c112 = arith.constant 112 : index
    %c0_29 = arith.constant 0 : index
    %65 = vector.load %arg2[%c112, %c0_29] : memref<224x384xbf16, #tpu.memory_space<vmem>>, vector<8x16xbf16>
    %66 = arith.truncf %64 : vector<16x128xf32> to vector<16x128xbf16>
    %cst_30 = arith.constant dense<0.000000e+00> : vector<8x128xf32>
    %67 = tpu.matmul %65, %66, %cst_30 {dimension_numbers = #tpu.dot_dimension_numbers<[1], [0], [0], [1], [0, 0, 1, 1], [], []>} : vector<8x16xbf16>, vector<16x128xbf16>, vector<8x128xf32> -> vector<8x128xf32>
    %68 = vector.extract_strided_slice %67 {offsets = [0, 0], sizes = [8, 32], strides = [1, 1]} : vector<8x128xf32> to vector<8x32xf32>
    %69 = arith.truncf %68 : vector<8x32xf32> to vector<8x32xbf16>
    %c128 = arith.constant 128 : index
    %c0_31 = arith.constant 0 : index
    %70 = vector.load %arg2[%c128, %c0_31] : memref<224x384xbf16, #tpu.memory_space<vmem>>, vector<32x128xbf16>
    %cst_32 = arith.constant dense<0.000000e+00> : vector<8x128xf32>
    %71 = tpu.matmul %69, %70, %cst_32 {dimension_numbers = #tpu.dot_dimension_numbers<[1], [0], [0], [1], [0, 0, 1, 1], [], []>} : vector<8x32xbf16>, vector<32x128xbf16>, vector<8x128xf32> -> vector<8x128xf32>
    %c96_33 = arith.constant 96 : index
    %c0_34 = arith.constant 0 : index
    %72 = vector.load %arg3[%c96_33, %c0_34] : memref<144x128xf32, #tpu.memory_space<vmem>>, vector<1x128xf32>
    %c97 = arith.constant 97 : index
    %c0_35 = arith.constant 0 : index
    %73 = vector.load %arg3[%c97, %c0_35] : memref<144x128xf32, #tpu.memory_space<vmem>>, vector<1x128xf32>
    %c98 = arith.constant 98 : index
    %c0_36 = arith.constant 0 : index
    %74 = vector.load %arg3[%c98, %c0_36] : memref<144x128xf32, #tpu.memory_space<vmem>>, vector<1x128xf32>
    %c99 = arith.constant 99 : index
    %c0_37 = arith.constant 0 : index
    %75 = vector.load %arg3[%c99, %c0_37] : memref<144x128xf32, #tpu.memory_space<vmem>>, vector<1x128xf32>
    %c101 = arith.constant 101 : index
    %c0_38 = arith.constant 0 : index
    %76 = vector.load %arg3[%c101, %c0_38] : memref<144x128xf32, #tpu.memory_space<vmem>>, vector<1x128xf32>
    %c102 = arith.constant 102 : index
    %c0_39 = arith.constant 0 : index
    %77 = vector.load %arg3[%c102, %c0_39] : memref<144x128xf32, #tpu.memory_space<vmem>>, vector<1x128xf32>
    %c103 = arith.constant 103 : index
    %c0_40 = arith.constant 0 : index
    %78 = vector.load %arg3[%c103, %c0_40] : memref<144x128xf32, #tpu.memory_space<vmem>>, vector<1x128xf32>
    %c104 = arith.constant 104 : index
    %c0_41 = arith.constant 0 : index
    %79 = vector.load %arg3[%c104, %c0_41] : memref<144x128xf32, #tpu.memory_space<vmem>>, vector<1x128xf32>
    %c160 = arith.constant 160 : index
    %c0_42 = arith.constant 0 : index
    %80 = vector.load %arg2[%c160, %c0_42] : memref<224x384xbf16, #tpu.memory_space<vmem>>, vector<16x8xbf16>
    %81 = arith.truncf %71 : vector<8x128xf32> to vector<8x128xbf16>
    %cst_43 = arith.constant dense<0.000000e+00> : vector<16x128xf32>
    %82 = tpu.matmul %80, %81, %cst_43 {dimension_numbers = #tpu.dot_dimension_numbers<[1], [0], [0], [1], [0, 0, 1, 1], [], []>} : vector<16x8xbf16>, vector<8x128xbf16>, vector<16x128xf32> -> vector<16x128xf32>
    %c112_44 = arith.constant 112 : index
    %c0_45 = arith.constant 0 : index
    %83 = vector.load %arg3[%c112_44, %c0_45] : memref<144x128xf32, #tpu.memory_space<vmem>>, vector<16x1xf32>
    %84 = vector.broadcast %83 : vector<16x1xf32> to vector<16x128xf32>
    %85 = arith.addf %82, %84 : vector<16x128xf32>
    %cst_46 = arith.constant 2.000000e-01 : f32
    %86 = vector.broadcast %cst_46 : f32 to vector<16x128xf32>
    %87 = arith.mulf %86, %85 : vector<16x128xf32>
    %88 = arith.maximumf %85, %87 : vector<16x128xf32>
    %c9_i32 = arith.constant 9 : i32
    %89 = tpu.dynamic_rotate %88 by %c9_i32 dim 1 : vector<16x128xf32>, i32 -> vector<16x128xf32>
    %90 = vector.broadcast %72 : vector<1x128xf32> to vector<16x128xf32>
    %91 = arith.mulf %89, %90 : vector<16x128xf32>
    %c8_i32 = arith.constant 8 : i32
    %92 = tpu.dynamic_rotate %88 by %c8_i32 dim 1 : vector<16x128xf32>, i32 -> vector<16x128xf32>
    %93 = vector.broadcast %73 : vector<1x128xf32> to vector<16x128xf32>
    %94 = arith.mulf %92, %93 : vector<16x128xf32>
    %c7_i32 = arith.constant 7 : i32
    %95 = tpu.dynamic_rotate %88 by %c7_i32 dim 1 : vector<16x128xf32>, i32 -> vector<16x128xf32>
    %96 = vector.broadcast %74 : vector<1x128xf32> to vector<16x128xf32>
    %97 = arith.mulf %95, %96 : vector<16x128xf32>
    %c1_i32_47 = arith.constant 1 : i32
    %98 = tpu.dynamic_rotate %88 by %c1_i32_47 dim 1 : vector<16x128xf32>, i32 -> vector<16x128xf32>
    %99 = vector.broadcast %75 : vector<1x128xf32> to vector<16x128xf32>
    %100 = arith.mulf %98, %99 : vector<16x128xf32>
    %c127_i32_48 = arith.constant 127 : i32
    %101 = tpu.dynamic_rotate %88 by %c127_i32_48 dim 1 : vector<16x128xf32>, i32 -> vector<16x128xf32>
    %102 = vector.broadcast %76 : vector<1x128xf32> to vector<16x128xf32>
    %103 = arith.mulf %101, %102 : vector<16x128xf32>
    %c121_i32 = arith.constant 121 : i32
    %104 = tpu.dynamic_rotate %88 by %c121_i32 dim 1 : vector<16x128xf32>, i32 -> vector<16x128xf32>
    %105 = vector.broadcast %77 : vector<1x128xf32> to vector<16x128xf32>
    %106 = arith.mulf %104, %105 : vector<16x128xf32>
    %c120_i32 = arith.constant 120 : i32
    %107 = tpu.dynamic_rotate %88 by %c120_i32 dim 1 : vector<16x128xf32>, i32 -> vector<16x128xf32>
    %108 = vector.broadcast %78 : vector<1x128xf32> to vector<16x128xf32>
    %109 = arith.mulf %107, %108 : vector<16x128xf32>
    %c119_i32 = arith.constant 119 : i32
    %110 = tpu.dynamic_rotate %88 by %c119_i32 dim 1 : vector<16x128xf32>, i32 -> vector<16x128xf32>
    %111 = vector.broadcast %79 : vector<1x128xf32> to vector<16x128xf32>
    %112 = arith.mulf %110, %111 : vector<16x128xf32>
    %113 = tpu.concatenate %91, %94, %97, %100, %88, %103, %106, %109, %112 in 0 : vector<16x128xf32>, vector<16x128xf32>, vector<16x128xf32>, vector<16x128xf32>, vector<16x128xf32>, vector<16x128xf32>, vector<16x128xf32>, vector<16x128xf32>, vector<16x128xf32> -> vector<144x128xf32>
    %114 = arith.truncf %113 : vector<144x128xf32> to vector<144x128xbf16>
    %c176 = arith.constant 176 : index
    %c0_49 = arith.constant 0 : index
    %115 = vector.load %arg2[%c176, %c0_49] : memref<224x384xbf16, #tpu.memory_space<vmem>>, vector<16x144xbf16>
    %cst_50 = arith.constant dense<0.000000e+00> : vector<16x128xf32>
    %116 = tpu.matmul %115, %114, %cst_50 {dimension_numbers = #tpu.dot_dimension_numbers<[1], [0], [0], [1], [0, 0, 1, 1], [], []>} : vector<16x144xbf16>, vector<144x128xbf16>, vector<16x128xf32> -> vector<16x128xf32>
    %c128_51 = arith.constant 128 : index
    %c0_52 = arith.constant 0 : index
    %117 = vector.load %arg3[%c128_51, %c0_52] : memref<144x128xf32, #tpu.memory_space<vmem>>, vector<16x1xf32>
    %118 = vector.broadcast %117 : vector<16x1xf32> to vector<16x128xf32>
    %119 = arith.addf %116, %118 : vector<16x128xf32>
    %cst_53 = arith.constant 2.000000e-01 : f32
    %120 = vector.broadcast %cst_53 : f32 to vector<16x128xf32>
    %121 = arith.mulf %120, %119 : vector<16x128xf32>
    %122 = arith.maximumf %119, %121 : vector<16x128xf32>
    %c192 = arith.constant 192 : index
    %c0_54 = arith.constant 0 : index
    %123 = vector.load %arg2[%c192, %c0_54] : memref<224x384xbf16, #tpu.memory_space<vmem>>, vector<8x16xbf16>
    %124 = arith.truncf %122 : vector<16x128xf32> to vector<16x128xbf16>
    %cst_55 = arith.constant dense<0.000000e+00> : vector<8x128xf32>
    %125 = tpu.matmul %123, %124, %cst_55 {dimension_numbers = #tpu.dot_dimension_numbers<[1], [0], [0], [1], [0, 0, 1, 1], [], []>} : vector<8x16xbf16>, vector<16x128xbf16>, vector<8x128xf32> -> vector<8x128xf32>
    %126 = arith.addf %71, %125 : vector<8x128xf32>
    %c208 = arith.constant 208 : index
    %c0_56 = arith.constant 0 : index
    %127 = vector.load %arg2[%c208, %c0_56] : memref<224x384xbf16, #tpu.memory_space<vmem>>, vector<3x8xbf16>
    %128 = arith.truncf %126 : vector<8x128xf32> to vector<8x128xbf16>
    %cst_57 = arith.constant dense<0.000000e+00> : vector<3x128xf32>
    %129 = tpu.matmul %127, %128, %cst_57 {dimension_numbers = #tpu.dot_dimension_numbers<[1], [0], [0], [1], [0, 0, 1, 1], [], []>} : vector<3x8xbf16>, vector<8x128xbf16>, vector<3x128xf32> -> vector<3x128xf32>
    %c0_58 = arith.constant 0 : index
    %c0_59 = arith.constant 0 : index
    %130 = vector.load %arg4[%c0_58, %c0_59] : memref<3x128xf32, #tpu.memory_space<vmem>>, vector<3x128xf32>
    tpu.vector_store %arg4[%c0_58, %c0_59], %129 {strides = array<i32>} : memref<3x128xf32, #tpu.memory_space<vmem>>, vector<3x128xf32>,
    return
  }
  func.func @transform_0(%arg0: i32) -> (i32, i32, i32) {
    %c0_i32 = arith.constant 0 : i32
    %c0_i32_0 = arith.constant 0 : i32
    %c0_i32_1 = arith.constant 0 : i32
    return %arg0, %c0_i32, %c0_i32_0 : i32, i32, i32
  }
  func.func @transform_1(%arg0: i32) -> (i32, i32) {
    %c0_i32 = arith.constant 0 : i32
    %c0_i32_0 = arith.constant 0 : i32
    %c0_i32_1 = arith.constant 0 : i32
    return %c0_i32, %c0_i32_0 : i32, i32
  }
  func.func @transform_2(%arg0: i32) -> (i32, i32) {
    %c0_i32 = arith.constant 0 : i32
    %c0_i32_0 = arith.constant 0 : i32
    %c0_i32_1 = arith.constant 0 : i32
    return %c0_i32, %c0_i32_0 : i32, i32
  }
  func.func @transform_3(%arg0: i32) -> (i32, i32) {
    %c0_i32 = arith.constant 0 : i32
    %c0_i32_0 = arith.constant 0 : i32
    return %c0_i32, %arg0 : i32, i32
  }
}

</mosaic_0001>

<bundles_post_ra>
// kernel: forward.1
= control target key start
LH: loop header
LB: loop body
LE: loop exit
PB: predicated region body
PF: predicated region fallthrough
CT: control target
= control target key end

     0   :  { %v1262_v0 = vmov 0.0   ;;  %vm1263_vm0 = vmmov 0   ;;  %vm28_vm1 = vcmask 261120   ;;  %vm79_vm2 = vcmask 1040384   ;;  %s1265_s12 = smov 5   ;;  %s1266_s13 = smov 127   ;;  %s1594_s0 = inlined_call_operand.vmem [shape: f32[1,32,2], index: 0, kind: input, shape index: {}]   ;;  %s1595_s1 = inlined_call_operand.vmem [shape: bf16[224,384], index: 1, kind: input, shape index: {}]   ;;  %s1596_s2 = inlined_call_operand.vmem [shape: f32[144,128], index: 2, kind: input, shape index: {}]   ;;  %s1597_s3 = inlined_call_operand.vmem [shape: f32[3,128], index: 3, kind: output, shape index: {}]  }
   0x1   :  { %1157 = vmatprep.subr.bf16.mxu0 %v1262_v0  ;;  %v15_v1 = vld [vmem:[%s1594_s0] sm:$0xff]  ;;  %v16_v2 = vld [vmem:[%s1594_s0 + $0x8] sm:$0xff]  ;;  %v17_v3 = vld [vmem:[%s1594_s0 + $0x10] sm:$0xff]  ;;  %1161 = vmatprep.mubr.msk.bf16.mxu0 %vm1263_vm0, %v1262_v0  ;;  %vm75_vm3 = vcmask 15360   ;;  %vm175_vm4 = vcmask 130048   ;;  %v1264_v18 = vmov 0  }
   0x2   :  { %v19_v4 = vpack.c.bf16 %v16_v2, %v15_v1  ;;  %v18_v5 = vld [vmem:[%s1594_s0 + $0x18] sm:$0xff]  ;;  %1165 = vmatprep.subr.bf16.mxu1 %v1262_v0  ;;  %1167 = vmatprep.mubr.msk.bf16.mxu1 %vm1263_vm0, %v1262_v0  ;;  %v1244_v7 = vld [vmem:[%s1595_s1] ss:$12 sps:$4 sm:$0xff]   ;;  %v143_v16 = vld [vmem:[%s1596_s2 + $0x30] sm:$0xff]  ;;  %s1267_s14 = smov 4   ;;  %s1268_s15 = smov 125  }
   0x3   :  { %v20_v6 = vpack.c.bf16 %v18_v5, %v17_v3  ;;  %v74_v8 = vld [vmem:[%s1595_s1 + $0x18] sm:$0x1]  ;;  %v1245_v15 = vld [vmem:[%s1595_s1 + $0x30] ss:$12 sps:$4 sm:$0xff]   ;;  %v141_v17 = vld [vmem:[%s1596_s2 + $0x20] sm:$0xff]  ;;  %1243 = vset.pattern.permute.xlu1 %v1264_v18  ;;  %1242 = vset.pattern.permute.xlu0 %v1264_v18  ;;  %s1269_s16 = smov 3  }
   0x4   :  { %1158 = vmatpush3.bf16.msra.mxu0 %v19_v4  ;;  %v81_v9 = vsel %vm79_vm2, %v74_v8, 0  ;;  %157 = vperm.xlu1 %1243, %v143_v16   ;;  %v144_v19 = vld [vmem:[%s1596_s2 + $0x38] sm:$0xff]  ;;  %v142_v20 = vld [vmem:[%s1596_s2 + $0x28] sm:$0xff]  ;;  %v124_v22 = vld [vmem:[%s1596_s2] sm:$0xff]  ;;  %s1270_s17 = smov 124   ;;  %s1271_s20 = smov 1  }
   0x5   :  { %1159 = vmatprep.subr.bf16.mxu0 %v1262_v0  ;;  %1166 = vmatpush3.bf16.msra.mxu1 %v81_v9  ;;  %v125_v23 = vld [vmem:[%s1596_s2 + $0x8] sm:$0xff]  ;;  %v1249_v53 = vld [vmem:[%s1595_s1 + $0x64] ss:$12 sps:$4 sm:$0xff]   ;;  %s1272_s23 = smov 123   ;;  %v396_v58 = vld [vmem:[%s1596_s2 + $0x58] sm:$0xff]  ;;  %vm751_vm5 = vcmask 1043456  }
   0x6   :  { %147 = vperm.xlu0 %1242, %v141_v17   ;;  %v1246_v30 = vld [vmem:[%s1595_s1 + $0x48] ss:$12 sps:$4 sm:$0xff]   ;;  %v393_v55 = vld [vmem:[%s1596_s2 + $0x40] sm:$0xff]  ;;  %v731_v60 = vld [vmem:[%s1596_s2 + $0x78] sm:$0xff]  ;;  %vm747_vm6 = vcmask 64512   ;;  %s1274_s18 = smov 8  }
   0x7   :  { %v1253_v54 = vld [vmem:[%s1595_s1 + $0x68] ss:$12 sps:$4 sm:$0xff]   ;;  %s1275_s19 = smov 7   ;;  %s1276_s21 = smov 121  }
   0x8   :  { %1160 = vmatpush3.bf16.msra.mxu0 %v20_v6  ;;  %162 = vperm.xlu1 %1243, %v144_v19   ;;  %v394_v56 = vld [vmem:[%s1596_s2 + $0x48] sm:$0xff]  ;;  %v395_v57 = vld [vmem:[%s1596_s2 + $0x50] sm:$0xff]  ;;  %s1277_s22 = smov 120  }
   0x9   :  { %v730_v59 = vld [vmem:[%s1596_s2 + $0x70] sm:$0xff] }
   0xa   :  { %152 = vperm.xlu0 %1242, %v142_v20   ;;  %v1070_v19 = vld [vmem:[%s1596_s2 + $0x15] ss:$0 sm:$0xff] }
   0xb   :  { %1162 = vmatmul.mubr.msk.bf16.vlgmr.msra.gmra.mrb[0].mxu0 %vm28_vm1, %v1244_v7 }
   0xc   :  { %485 = vmatprep.mubr.bf16.mxu0 %v1249_v53 }
  0x83   :  { %v158_v32 = vpop.permute.xlu1 %157 }
  0x85   :  { %v148_v31 = vpop.permute.xlu0 %147 }
  0x87   :  { %v163_v37 = vpop.permute.xlu1 %162 }
  0x89   :  { %v153_v36 = vpop.permute.xlu0 %152 }
  0xde   :  { %v66_v10 = vpop.f32.mrb[0].mxu0 }
  0xdf   :  { %v1163_v11 = vpop.f32.mrb[1].mxu0 }
  0xe0   :  { %v69_v12 = vpop.f32.mrb[2].mxu0  ;;  %v1066_v11 = vld [vmem:[%s1596_s2 + $0x10] ss:$0 sm:$0xff] }
  0xe1   :  { %v73_v13 = vpack.c.bf16 %v69_v12, %v66_v10  ;;  %v1164_v14 = vpop.f32.mrb[3].mxu0 }
  0xe3   :  { %1168 = vmatmul.mubr.msk.bf16.vlgmr.msra.gmra.mrb[0].mxu1 %vm75_vm3, %v73_v13 }
  0xe4   :  { %1173 = vmatprep.mubr.msk.bf16.mxu1 %vm175_vm4, %v1245_v15 }
 0x1b6   :  { %v117_v21 = vpop.f32.mrb[0].mxu1 }
 0x1b7   :  { %v1169_v24 = vpop.f32.mrb[1].mxu1  ;;  %v1349_v26 = vmul.f32 %v124_v22, %v117_v21 }
 0x1b8   :  { %v120_v25 = vpop.f32.mrb[2].mxu1 }
 0x1b9   :  { %v1351_v27 = vmul.f32 %v125_v23, %v120_v25  ;;  %v1170_v28 = vpop.f32.mrb[3].mxu1 }
 0x1bb   :  { %v140_v29 = vpack.c.bf16 %v1351_v27, %v1349_v26 }
 0x1bd   :  { %1171 = vmatprep.subr.bf16.mxu1 %v140_v29 }
 0x1be   :  { %1172 = vmatpush3.bf16.msra.mxu1 %v140_v29 }
 0x1c1   :  { %1174 = vmatmul.mubr.msk.bf16.vlgmr.msra.gmra.mrb[4].mxu1 %vm175_vm4, %v1246_v30  ;;  %v1067_v30 = vld [vmem:[%s1596_s2 + $0x11] ss:$0 sm:$0xff] }
 0x1c2   :  { %1181 = vmatprep.mubr.msk.bf16.mxu1 %vm28_vm1, %v1253_v54 }
 0x294   :  { %v1175_v33 = vpop.f32.mrb[4].mxu1 }
 0x295   :  { %v225_v34 = vadd.f32 %v1175_v33, %v158_v32  ;;  %v216_v35 = vpop.f32.mrb[5].mxu1 }
 0x296   :  { %v217_v38 = vadd.f32 %v216_v35, %v148_v31  ;;  %v1176_v39 = vpop.f32.mrb[6].mxu1 }
 0x297   :  { %v233_v40 = vmul.f32 0.2, %v225_v34  ;;  %v228_v41 = vadd.f32 %v1176_v39, %v163_v37  ;;  %v219_v42 = vpop.f32.mrb[7].mxu1  ;;  %v1071_v39 = vld [vmem:[%s1596_s2 + $0x16] ss:$0 sm:$0xff] }
 0x298   :  { %v231_v43 = vmul.f32 0.2, %v217_v38  ;;  %v220_v44 = vadd.f32 %v219_v42, %v153_v36 }
 0x299   :  { %v1359_v45 = vmax.f32 %v225_v34, %v233_v40  ;;  %v234_v46 = vmul.f32 0.2, %v228_v41 }
 0x29a   :  { %v232_v47 = vmul.f32 0.2, %v220_v44  ;;  %v235_v49 = vmax.f32 %v217_v38, %v231_v43 }
 0x29b   :  { %v1361_v48 = vmax.f32 %v228_v41, %v234_v46  ;;  %243 = vrot.lane.b32.xlu0 %v1359_v45, %s1265_s12 }
 0x29c   :  { %v236_v50 = vmax.f32 %v220_v44, %v232_v47 }
 0x29d   :  { %245 = vrot.lane.b32.xlu1 %v1361_v48, %s1265_s12  ;;  %v376_v51 = vpack.c.bf16 %v1361_v48, %v1359_v45 }
 0x29e   :  { %v375_v52 = vpack.c.bf16 %v236_v50, %v235_v49 }
 0x29f   :  { %307 = vrot.lane.b32.xlu0 %v1359_v45, %s1266_s13 }
 0x2a0   :  { %1111 = vmatprep.subr.bf16.mxu0 %v375_v52 }
 0x2a1   :  { %309 = vrot.lane.b32.xlu1 %v1361_v48, %s1266_s13 }
 0x2a3   :  { %259 = vrot.lane.b32.xlu0 %v1359_v45, %s1267_s14 }
 0x2a5   :  { %261 = vrot.lane.b32.xlu1 %v1361_v48, %s1267_s14 }
 0x2a7   :  { %323 = vrot.lane.b32.xlu0 %v1359_v45, %s1268_s15 }
 0x2a9   :  { %325 = vrot.lane.b32.xlu1 %v1361_v48, %s1268_s15 }
 0x2ab   :  { %275 = vrot.lane.b32.xlu0 %v1359_v45, %s1269_s16 }
 0x2ad   :  { %277 = vrot.lane.b32.xlu1 %v1361_v48, %s1269_s16 }
 0x2af   :  { %339 = vrot.lane.b32.xlu0 %v1359_v45, %s1270_s17 }
 0x2b1   :  { %341 = vrot.lane.b32.xlu1 %v1361_v48, %s1270_s17 }
 0x2b3   :  { %239 = vrot.lane.b32.xlu0 %v235_v49, %s1265_s12 }
 0x2b5   :  { %241 = vrot.lane.b32.xlu1 %v236_v50, %s1265_s12 }
 0x2b7   :  { %303 = vrot.lane.b32.xlu0 %v235_v49, %s1266_s13 }
 0x2b9   :  { %305 = vrot.lane.b32.xlu1 %v236_v50, %s1266_s13 }
 0x2bb   :  { %255 = vrot.lane.b32.xlu0 %v235_v49, %s1267_s14 }
 0x2bd   :  { %257 = vrot.lane.b32.xlu1 %v236_v50, %s1267_s14 }
 0x2bf   :  { %319 = vrot.lane.b32.xlu0 %v235_v49, %s1268_s15 }
 0x2c1   :  { %321 = vrot.lane.b32.xlu1 %v236_v50, %s1268_s15 }
 0x2c3   :  { %271 = vrot.lane.b32.xlu0 %v235_v49, %s1269_s16 }
 0x2c5   :  { %273 = vrot.lane.b32.xlu1 %v236_v50, %s1269_s16 }
 0x2c7   :  { %335 = vrot.lane.b32.xlu0 %v235_v49, %s1270_s17 }
 0x2c9   :  { %337 = vrot.lane.b32.xlu1 %v236_v50, %s1270_s17  ;;  %s1273_s17 = smov 9  }
 0x2cb   :  { %287 = vrot.lane.b32.xlu0 %v235_v49, %s1271_s20 }
 0x2cd   :  { %289 = vrot.lane.b32.xlu1 %v236_v50, %s1271_s20 }
 0x2cf   :  { %291 = vrot.lane.b32.xlu0 %v1359_v45, %s1271_s20 }
 0x2d1   :  { %293 = vrot.lane.b32.xlu1 %v1361_v48, %s1271_s20 }
 0x2d3   :  { %351 = vrot.lane.b32.xlu0 %v235_v49, %s1272_s23 }
 0x2d5   :  { %353 = vrot.lane.b32.xlu1 %v236_v50, %s1272_s23 }
 0x2d7   :  { %355 = vrot.lane.b32.xlu0 %v1359_v45, %s1272_s23 }
 0x2d9   :  { %357 = vrot.lane.b32.xlu1 %v1361_v48, %s1272_s23  ;;  %v1068_v48 = vld [vmem:[%s1596_s2 + $0x12] ss:$0 sm:$0xff] }
 0x2db   :  { %399 = vperm.xlu0 %1242, %v393_v55  }
 0x2dd   :  { %404 = vperm.xlu1 %1243, %v394_v56  }
 0x2df   :  { %409 = vperm.xlu0 %1242, %v395_v57   ;;  %v1072_v57 = vld [vmem:[%s1596_s2 + $0x17] ss:$0 sm:$0xff] }
 0x2e1   :  { %414 = vperm.xlu1 %1243, %v396_v58  }
 0x2e3   :  { %734 = vperm.xlu0 %1242, %v730_v59  }
 0x2e5   :  { %739 = vperm.xlu1 %1243, %v731_v60  }
 0x30d   :  { %v244_v61 = vpop.permute.xlu0 %243 }
 0x30e   :  { %v253_v21 = vmul.f32 %v1066_v11, %v244_v61 }
 0x30f   :  { %v246_v62 = vpop.permute.xlu1 %245 }
 0x310   :  { %v254_v16 = vmul.f32 %v1066_v11, %v246_v62  ;;  %v1069_v62 = vld [vmem:[%s1596_s2 + $0x13] ss:$0 sm:$0xff] }
 0x311   :  { %v308_v63 = vpop.permute.xlu0 %307 }
 0x312   :  { %v368_v25 = vpack.c.bf16 %v254_v16, %v253_v21  ;;  %v317_v34 = vmul.f32 %v1070_v19, %v308_v63  ;;  %v1073_v16 = vld [vmem:[%s1596_s2 + $0x18] ss:$0 sm:$0xff] }
 0x313   :  { %v310_v1 = vpop.permute.xlu1 %309 }
 0x314   :  { %v318_v29 = vmul.f32 %v1070_v19, %v310_v1 }
 0x315   :  { %v260_v2 = vpop.permute.xlu0 %259 }
 0x316   :  { %v378_v38 = vpack.c.bf16 %v318_v29, %v317_v34  ;;  %v269_v41 = vmul.f32 %v1067_v30, %v260_v2 }
 0x317   :  { %v262_v3 = vpop.permute.xlu1 %261 }
 0x318   :  { %v270_v36 = vmul.f32 %v1067_v30, %v262_v3 }
 0x319   :  { %v324_v4 = vpop.permute.xlu0 %323 }
 0x31a   :  { %v370_v45 = vpack.c.bf16 %v270_v36, %v269_v41  ;;  %v333_v52 = vmul.f32 %v1071_v39, %v324_v4 }
 0x31b   :  { %v326_v5 = vpop.permute.xlu1 %325 }
 0x31c   :  { %v334_v47 = vmul.f32 %v1071_v39, %v326_v5 }
 0x31d   :  { %v276_v6 = vpop.permute.xlu0 %275 }
 0x31e   :  { %v380_v56 = vpack.c.bf16 %v334_v47, %v333_v52  ;;  %v285_v59 = vmul.f32 %v1068_v48, %v276_v6 }
 0x31f   :  { %v278_v7 = vpop.permute.xlu1 %277 }
 0x320   :  { %v286_v54 = vmul.f32 %v1068_v48, %v278_v7 }
 0x321   :  { %v1414_v8 = vpop.permute.xlu0 %339 }
 0x322   :  { %v372_v1 = vpack.c.bf16 %v286_v54, %v285_v59 }
 0x323   :  { %v1416_v9 = vpop.permute.xlu1 %341 }
 0x324   :  { %v350_v3 = vmul.f32 %v1072_v57, %v1416_v9 }
 0x325   :  { %v240_v10 = vpop.permute.xlu0 %239 }
 0x326   :  { %v251_v13 = vmul.f32 %v1066_v11, %v240_v10  ;;  %v349_v10 = vmul.f32 %v1072_v57, %v1414_v8  ;;  %v1247_v8 = vld [vmem:[%s1595_s1 + $0x60] ss:$12 sps:$4 sm:$0xff]  }
 0x327   :  { %v242_v12 = vpop.permute.xlu1 %241 }
 0x328   :  { %v252_v14 = vmul.f32 %v1066_v11, %v242_v12  ;;  %v382_v12 = vpack.c.bf16 %v350_v3, %v349_v10 }
 0x329   :  { %v304_v15 = vpop.permute.xlu0 %303 }
 0x32a   :  { %v367_v17 = vpack.c.bf16 %v252_v14, %v251_v13  ;;  %v315_v22 = vmul.f32 %v1070_v19, %v304_v15 }
 0x32b   :  { %v306_v20 = vpop.permute.xlu1 %305 }
 0x32c   :  { %v316_v23 = vmul.f32 %v1070_v19, %v306_v20  ;;  %1112 = vmatpush3.bf16.msra.mxu0 %v367_v17 }
 0x32d   :  { %v256_v24 = vpop.permute.xlu0 %255  ;;  %1113 = vmatprep.subr.bf16.mxu0 %v376_v51 }
 0x32e   :  { %v377_v28 = vpack.c.bf16 %v316_v23, %v315_v22  ;;  %v267_v32 = vmul.f32 %v1067_v30, %v256_v24  ;;  %v1250_v22 = vld [vmem:[%s1595_s1 + $0x7c] ss:$12 sps:$4 sm:$0xff]  }
 0x32f   :  { %v258_v31 = vpop.permute.xlu1 %257 }
 0x330   :  { %v268_v33 = vmul.f32 %v1067_v30, %v258_v31  ;;  %1114 = vmatpush3.bf16.msra.mxu0 %v368_v25  ;;  %v1252_v31 = vld [vmem:[%s1595_s1 + $0x78] ss:$12 sps:$4 sm:$0xff]  }
 0x331   :  { %v320_v35 = vpop.permute.xlu0 %319  ;;  %1115 = vmatprep.subr.bf16.mxu0 %v377_v28 }
 0x332   :  { %v369_v37 = vpack.c.bf16 %v268_v33, %v267_v32  ;;  %v331_v42 = vmul.f32 %v1071_v39, %v320_v35  ;;  %v1254_v32 = vld [vmem:[%s1595_s1 + $0x80] ss:$12 sps:$4 sm:$0xff]  }
 0x333   :  { %v322_v40 = vpop.permute.xlu1 %321 }
 0x334   :  { %v332_v43 = vmul.f32 %v1071_v39, %v322_v40  ;;  %1116 = vmatpush3.bf16.msra.mxu0 %v369_v37 }
 0x335   :  { %v272_v44 = vpop.permute.xlu0 %271  ;;  %1117 = vmatprep.subr.bf16.mxu0 %v378_v38 }
 0x336   :  { %v379_v46 = vpack.c.bf16 %v332_v43, %v331_v42  ;;  %v283_v50 = vmul.f32 %v1068_v48, %v272_v44 }
 0x337   :  { %v274_v49 = vpop.permute.xlu1 %273 }
 0x338   :  { %v284_v51 = vmul.f32 %v1068_v48, %v274_v49  ;;  %1118 = vmatpush3.bf16.msra.mxu0 %v370_v45 }
 0x339   :  { %v336_v53 = vpop.permute.xlu0 %335  ;;  %1119 = vmatprep.subr.bf16.mxu0 %v379_v46 }
 0x33a   :  { %v371_v55 = vpack.c.bf16 %v284_v51, %v283_v50  ;;  %v347_v60 = vmul.f32 %v1072_v57, %v336_v53 }
 0x33b   :  { %v338_v58 = vpop.permute.xlu1 %337 }
 0x33c   :  { %v348_v61 = vmul.f32 %v1072_v57, %v338_v58  ;;  %1120 = vmatpush3.bf16.msra.mxu0 %v371_v55 }
 0x33d   :  { %v288_v63 = vpop.permute.xlu0 %287  ;;  %1121 = vmatprep.subr.bf16.mxu0 %v380_v56 }
 0x33e   :  { %v381_v2 = vpack.c.bf16 %v348_v61, %v347_v60  ;;  %v299_v5 = vmul.f32 %v1069_v62, %v288_v63 }
 0x33f   :  { %v290_v4 = vpop.permute.xlu1 %289 }
 0x340   :  { %v300_v7 = vmul.f32 %v1069_v62, %v290_v4  ;;  %1122 = vmatpush3.bf16.msra.mxu0 %v372_v1 }
 0x341   :  { %v292_v6 = vpop.permute.xlu0 %291  ;;  %1123 = vmatprep.subr.bf16.mxu0 %v381_v2 }
 0x342   :  { %v373_v11 = vpack.c.bf16 %v300_v7, %v299_v5  ;;  %v301_v14 = vmul.f32 %v1069_v62, %v292_v6  ;;  %v1255_v6 = vld [vmem:[%s1595_s1 + $0x90] ss:$12 sps:$4 sm:$0xff]  }
 0x343   :  { %v294_v13 = vpop.permute.xlu1 %293 }
 0x344   :  { %v302_v15 = vmul.f32 %v1069_v62, %v294_v13  ;;  %1124 = vmatpush3.bf16.msra.mxu0 %v373_v11 }
 0x345   :  { %v352_v17 = vpop.permute.xlu0 %351  ;;  %1125 = vmatprep.subr.bf16.mxu0 %v382_v12 }
 0x346   :  { %v374_v9 = vpack.c.bf16 %v302_v15, %v301_v14  ;;  %v363_v20 = vmul.f32 %v1073_v16, %v352_v17 }
 0x347   :  { %v354_v19 = vpop.permute.xlu1 %353 }
 0x348   :  { %v364_v21 = vmul.f32 %v1073_v16, %v354_v19  ;;  %1126 = vmatpush3.bf16.msra.mxu0 %v374_v9  ;;  %v614_v9 = vld [vmem:[%s1595_s1 + $0xa8] sm:$0xf]  ;;  %v1256_v19 = vld [vmem:[%s1595_s1 + $0xc0] ss:$12 sps:$4 sm:$0xff]  }
 0x349   :  { %v356_v23 = vpop.permute.xlu0 %355  ;;  %915 = vmatprep.subr.bf16.mxu0 %v1264_v18 }
 0x34a   :  { %v383_v24 = vpack.c.bf16 %v364_v21, %v363_v20  ;;  %v365_v28 = vmul.f32 %v1073_v16, %v356_v23 }
 0x34b   :  { %v358_v25 = vpop.permute.xlu1 %357  ;;  %486 = vmatmul.mubr.bf16.vlgmr.msra.gmra.mrb[4].mxu0 %v1247_v8 }
 0x34c   :  { %v366_v29 = vmul.f32 %v1073_v16, %v358_v25  ;;  %1177 = vmatprep.subr.bf16.mxu1 %v383_v24  ;;  %493 = vmatprep.mubr.bf16.mxu0 %v1250_v22 }
 0x34d   :  { %1178 = vmatpush3.bf16.msra.mxu1 %v383_v24 }
 0x34e   :  { %v384_v30 = vpack.c.bf16 %v366_v29, %v365_v28 }
 0x350   :  { %1179 = vmatprep.subr.bf16.mxu1 %v384_v30 }
 0x351   :  { %1180 = vmatpush3.bf16.msra.mxu1 %v384_v30 }
 0x352   :  { %1185 = vmatprep.subr.bf16.mxu1 %v1262_v0 }
 0x353   :  { %494 = vmatmul.mubr.bf16.gmra.mrb[8].mxu0 %v1252_v31  ;;  %v1258_v31 = vld [vmem:[%s1595_s1 + $0xf0] ss:$12 sps:$4 sm:$0xff]  }
 0x354   :  { %1182 = vmatmul.mubr.msk.bf16.vlgmr.msra.gmra.mrb[8].mxu1 %vm28_vm1, %v1254_v32 }
 0x355   :  { %1189 = vmatprep.mubr.msk.bf16.mxu1 %vm1263_vm0, %v1262_v0 }
 0x35a   :  { %v400_v35 = vpop.permute.xlu0 %399 }
 0x35c   :  { %v405_v40 = vpop.permute.xlu1 %404 }
 0x35e   :  { %v410_v41 = vpop.permute.xlu0 %409 }
 0x360   :  { %v415_v56 = vpop.permute.xlu1 %414 }
 0x362   :  { %v735_v32 = vpop.permute.xlu0 %734 }
 0x41e   :  { %v1127_v33 = vpop.f32.mrb[4].mxu0 }
 0x41f   :  { %v1128_v34 = vpop.f32.mrb[5].mxu0 }
 0x420   :  { %v1129_v36 = vadd.f32 %v1128_v34, %v1127_v33  ;;  %v1130_v37 = vpop.f32.mrb[6].mxu0 }
 0x421   :  { %v1131_v38 = vpop.f32.mrb[7].mxu0 }
 0x422   :  { %v1132_v39 = vadd.f32 %v1131_v38, %v1130_v37  ;;  %v488_v45 = vadd.f32 %v1129_v36, %v400_v35  ;;  %v740_v36 = vpop.permute.xlu1 %739 }
 0x424   :  { %v491_v52 = vadd.f32 %v1132_v39, %v405_v40 }
 0x426   :  { %v1133_v42 = vpop.f32.mrb[8].mxu0 }
 0x427   :  { %v1134_v43 = vpop.f32.mrb[9].mxu0  ;;  %v1183_v44 = vpop.f32.mrb[8].mxu1 }
 0x428   :  { %v1135_v46 = vadd.f32 %v1134_v43, %v1133_v42  ;;  %v1136_v47 = vpop.f32.mrb[10].mxu0  ;;  %v536_v48 = vpop.f32.mrb[9].mxu1 }
 0x429   :  { %v537_v49 = vadd.f32 %v536_v48, %v488_v45  ;;  %v1137_v50 = vpop.f32.mrb[11].mxu0  ;;  %v1184_v51 = vpop.f32.mrb[10].mxu1  ;;  %v1261_v45 = vld [vmem:[%s1595_s1 + $0x10c] ss:$12 sps:$4 sm:$0xff]   ;;  %v1090_v48 = vld [vmem:[%s1596_s2 + $0x60] ss:$0 sm:$0xff] }
 0x42a   :  { %v496_v53 = vadd.f32 %v1135_v46, %v410_v41  ;;  %v1138_v54 = vadd.f32 %v1137_v50, %v1136_v47  ;;  %v539_v55 = vpop.f32.mrb[11].mxu1  ;;  %1100 = vmatprep.mubr.msk.bf16.mxu0 %vm175_vm4, %v1261_v45  ;;  %v891_v46 = vld [vmem:[%s1596_s2 + $0x80] sm:$0xff]  ;;  %v892_v47 = vld [vmem:[%s1596_s2 + $0x88] sm:$0xff] }
 0x42b   :  { %v551_v57 = vmul.f32 0.2, %v537_v49  ;;  %v540_v58 = vadd.f32 %v539_v55, %v491_v52 }
 0x42c   :  { %v545_v59 = vadd.f32 %v1183_v44, %v496_v53  ;;  %v499_v60 = vadd.f32 %v1138_v54, %v415_v56  ;;  %v1091_v53 = vld [vmem:[%s1596_s2 + $0x61] ss:$0 sm:$0xff] }
 0x42d   :  { %v552_v61 = vmul.f32 0.2, %v540_v58  ;;  %v555_v1 = vmax.f32 %v537_v49, %v551_v57 }
 0x42e   :  { %v553_v62 = vmul.f32 0.2, %v545_v59  ;;  %v548_v63 = vadd.f32 %v1184_v51, %v499_v60 }
 0x42f   :  { %v556_v2 = vmax.f32 %v540_v58, %v552_v61 }
 0x430   :  { %v554_v3 = vmul.f32 0.2, %v548_v63  ;;  %v557_v5 = vmax.f32 %v545_v59, %v553_v62  ;;  %v1092_v59 = vld [vmem:[%s1596_s2 + $0x62] ss:$0 sm:$0xff] }
 0x431   :  { %v561_v4 = vpack.c.bf16 %v556_v2, %v555_v1  ;;  %v1093_v2 = vld [vmem:[%s1596_s2 + $0x63] ss:$0 sm:$0xff] }
 0x432   :  { %v558_v7 = vmax.f32 %v548_v63, %v554_v3 }
 0x433   :  { %1186 = vmatpush3.bf16.msra.mxu1 %v561_v4 }
 0x434   :  { %v562_v10 = vpack.c.bf16 %v558_v7, %v557_v5  ;;  %1187 = vmatprep.subr.bf16.mxu1 %v1262_v0 }
 0x437   :  { %1188 = vmatpush3.bf16.msra.mxu1 %v562_v10 }
 0x438   :  { %1193 = vmatprep.subr.bf16.mxu1 %v1262_v0 }
 0x43a   :  { %1190 = vmatmul.mubr.msk.bf16.vlgmr.msra.gmra.mrb[12].mxu1 %vm28_vm1, %v1255_v6 }
 0x43b   :  { %1195 = vmatprep.mubr.msk.bf16.mxu1 %vm1263_vm0, %v1262_v0 }
 0x50d   :  { %v605_v11 = vpop.f32.mrb[12].mxu1 }
 0x50e   :  { %v1191_v12 = vpop.f32.mrb[13].mxu1  ;;  %v612_v14 = vadd.f32 %v605_v11, %v1349_v26  ;;  %v1257_v26 = vld [vmem:[%s1595_s1 + $0xd8] ss:$12 sps:$4 sm:$0xff]  }
 0x50f   :  { %v608_v13 = vpop.f32.mrb[14].mxu1 }
 0x510   :  { %v613_v15 = vadd.f32 %v608_v13, %v1351_v27  ;;  %v1192_v16 = vpop.f32.mrb[15].mxu1  ;;  %v1094_v13 = vld [vmem:[%s1596_s2 + $0x65] ss:$0 sm:$0xff] }
 0x512   :  { %v615_v17 = vpack.c.bf16 %v613_v15, %v612_v14 }
 0x514   :  { %1194 = vmatpush3.bf16.msra.mxu1 %v615_v17 }
 0x515   :  { %1199 = vmatprep.subr.bf16.mxu1 %v1262_v0 }
 0x517   :  { %1196 = vmatmul.mubr.msk.bf16.vlgmr.msra.gmra.mrb[16].mxu1 %vm175_vm4, %v614_v9  ;;  %v1095_v9 = vld [vmem:[%s1596_s2 + $0x66] ss:$0 sm:$0xff] }
 0x518   :  { %1200 = vmatpush3.bf16.msra.mxu1 %v1256_v19  ;;  %1203 = vmatprep.mubr.msk.bf16.mxu1 %vm1263_vm0, %v1262_v0 }
 0x519   :  { %1201 = vmatprep.subr.bf16.mxu1 %v1262_v0 }
 0x51c   :  { %1202 = vmatpush3.bf16.msra.mxu1 %v1257_v26 }
 0x51d   :  { %1207 = vmatprep.subr.bf16.mxu1 %v1262_v0 }
 0x5ea   :  { %v653_v27 = vpop.f32.mrb[16].mxu1 }
 0x5eb   :  { %v659_v8 = vpack.c.bf16 %v653_v27, %v653_v27  ;;  %v1197_v20 = vpop.f32.mrb[17].mxu1 }
 0x5ec   :  { %v656_v21 = vpop.f32.mrb[18].mxu1 }
 0x5ed   :  { %v1198_v22 = vpop.f32.mrb[19].mxu1  ;;  %1204 = vmatmul.mubr.msk.bf16.vlgmr.msra.gmra.mrb[20].mxu1 %vm28_vm1, %v659_v8  ;;  %v1096_v21 = vld [vmem:[%s1596_s2 + $0x67] ss:$0 sm:$0xff] }
 0x5ee   :  { %1209 = vmatprep.mubr.msk.bf16.mxu1 %vm1263_vm0, %v1262_v0 }
 0x6c0   :  { %v1492_v23 = vpop.f32.mrb[20].mxu1 }
 0x6c1   :  { %v729_v24 = vpack.c.bf16 %v1492_v23, %v1492_v23  ;;  %v1205_v25 = vpop.f32.mrb[21].mxu1 }
 0x6c2   :  { %v716_v28 = vpop.f32.mrb[22].mxu1 }
 0x6c3   :  { %v1206_v29 = vpop.f32.mrb[23].mxu1  ;;  %v753_v30 = vsel %vm751_vm5, %v729_v24, 0 }
 0x6c4   :  { %1208 = vmatpush3.bf16.msra.mxu1 %v753_v30  ;;  %v1097_v29 = vld [vmem:[%s1596_s2 + $0x68] ss:$0 sm:$0xff] }
 0x6c5   :  { %1213 = vmatprep.subr.bf16.mxu1 %v1262_v0 }
 0x6c7   :  { %1210 = vmatmul.mubr.msk.bf16.vlgmr.msra.gmra.mrb[24].mxu1 %vm747_vm6, %v1258_v31 }
 0x6c8   :  { %1215 = vmatprep.mubr.msk.bf16.mxu1 %vm1263_vm0, %v1262_v0 }
 0x79a   :  { %v789_v33 = vpop.f32.mrb[24].mxu1 }
 0x79b   :  { %v790_v34 = vadd.f32 %v789_v33, %v735_v32  ;;  %v1211_v35 = vpop.f32.mrb[25].mxu1 }
 0x79c   :  { %v792_v37 = vpop.f32.mrb[26].mxu1  ;;  %v1259_v35 = vld [vmem:[%s1595_s1 + $0x108] ss:$12 sps:$4 sm:$0xff]  }
 0x79d   :  { %v796_v38 = vmul.f32 0.2, %v790_v34  ;;  %v793_v39 = vadd.f32 %v792_v37, %v740_v36  ;;  %v1212_v40 = vpop.f32.mrb[27].mxu1 }
 0x79f   :  { %v1504_v41 = vmax.f32 %v790_v34, %v796_v38  ;;  %v797_v42 = vmul.f32 0.2, %v793_v39 }
 0x7a1   :  { %v1506_v43 = vmax.f32 %v793_v39, %v797_v42  ;;  %800 = vrot.lane.b32.xlu0 %v1504_v41, %s1273_s17 }
 0x7a3   :  { %802 = vrot.lane.b32.xlu1 %v1506_v43, %s1273_s17  ;;  %v884_v44 = vpack.c.bf16 %v1506_v43, %v1504_v41 }
 0x7a5   :  { %810 = vrot.lane.b32.xlu0 %v1504_v41, %s1274_s18 }
 0x7a7   :  { %812 = vrot.lane.b32.xlu1 %v1506_v43, %s1274_s18 }
 0x7a9   :  { %820 = vrot.lane.b32.xlu0 %v1504_v41, %s1275_s19 }
 0x7ab   :  { %822 = vrot.lane.b32.xlu1 %v1506_v43, %s1275_s19 }
 0x7ad   :  { %830 = vrot.lane.b32.xlu0 %v1504_v41, %s1271_s20 }
 0x7af   :  { %832 = vrot.lane.b32.xlu1 %v1506_v43, %s1271_s20  ;;  %s1278_s20 = smov 119  }
 0x7b1   :  { %840 = vrot.lane.b32.xlu0 %v1504_v41, %s1266_s13 }
 0x7b3   :  { %842 = vrot.lane.b32.xlu1 %v1506_v43, %s1266_s13 }
 0x7b5   :  { %850 = vrot.lane.b32.xlu0 %v1504_v41, %s1276_s21 }
 0x7b7   :  { %852 = vrot.lane.b32.xlu1 %v1506_v43, %s1276_s21 }
 0x7b9   :  { %860 = vrot.lane.b32.xlu0 %v1504_v41, %s1277_s22 }
 0x7bb   :  { %862 = vrot.lane.b32.xlu1 %v1506_v43, %s1277_s22 }
 0x7bd   :  { %870 = vrot.lane.b32.xlu0 %v1504_v41, %s1278_s20 }
 0x7bf   :  { %872 = vrot.lane.b32.xlu1 %v1506_v43, %s1278_s20 }
 0x7c1   :  { %895 = vperm.xlu0 %1242, %v891_v46  }
 0x7c3   :  { %900 = vperm.xlu1 %1243, %v892_v47  }
 0x813   :  { %v801_v49 = vpop.permute.xlu0 %800 }
 0x814   :  { %v808_v51 = vmul.f32 %v1090_v48, %v801_v49 }
 0x815   :  { %v803_v50 = vpop.permute.xlu1 %802 }
 0x816   :  { %v809_v52 = vmul.f32 %v1090_v48, %v803_v50  ;;  %v960_v48 = vld [vmem:[%s1595_s1 + $0x120] sm:$0xf] }
 0x817   :  { %v811_v54 = vpop.permute.xlu0 %810 }
 0x818   :  { %v880_v55 = vpack.c.bf16 %v809_v52, %v808_v51  ;;  %v818_v57 = vmul.f32 %v1091_v53, %v811_v54 }
 0x819   :  { %v813_v56 = vpop.permute.xlu1 %812 }
 0x81a   :  { %v819_v58 = vmul.f32 %v1091_v53, %v813_v56  ;;  %916 = vmatpush1.bf16.msra.mxu0 %v880_v55  ;;  %v1006_v56 = vld [vmem:[%s1595_s1 + $0x138] sm:$0x3] }
 0x81b   :  { %v821_v60 = vpop.permute.xlu0 %820  ;;  %917 = vmatprep.subr.bf16.mxu0 %v1264_v18 }
 0x81c   :  { %v881_v61 = vpack.c.bf16 %v819_v58, %v818_v57  ;;  %v828_v63 = vmul.f32 %v1092_v59, %v821_v60 }
 0x81d   :  { %v823_v62 = vpop.permute.xlu1 %822 }
 0x81e   :  { %v829_v1 = vmul.f32 %v1092_v59, %v823_v62  ;;  %918 = vmatpush1.bf16.msra.mxu0 %v881_v61 }
 0x81f   :  { %v831_v3 = vpop.permute.xlu0 %830  ;;  %919 = vmatprep.subr.bf16.mxu0 %v1264_v18 }
 0x820   :  { %v882_v4 = vpack.c.bf16 %v829_v1, %v828_v63  ;;  %v838_v7 = vmul.f32 %v1093_v2, %v831_v3 }
 0x821   :  { %v833_v5 = vpop.permute.xlu1 %832 }
 0x822   :  { %v839_v10 = vmul.f32 %v1093_v2, %v833_v5  ;;  %920 = vmatpush1.bf16.msra.mxu0 %v882_v4 }
 0x823   :  { %v841_v6 = vpop.permute.xlu0 %840  ;;  %921 = vmatprep.subr.bf16.mxu0 %v1264_v18 }
 0x824   :  { %v883_v11 = vpack.c.bf16 %v839_v10, %v838_v7  ;;  %v848_v17 = vmul.f32 %v1094_v13, %v841_v6 }
 0x825   :  { %v843_v12 = vpop.permute.xlu1 %842 }
 0x826   :  { %922 = vmatpush1.bf16.msra.mxu0 %v883_v11  ;;  %v849_v15 = vmul.f32 %v1094_v13, %v843_v12 }
 0x827   :  { %v851_v14 = vpop.permute.xlu0 %850  ;;  %923 = vmatprep.subr.bf16.mxu0 %v1264_v18 }
 0x828   :  { %v885_v19 = vpack.c.bf16 %v849_v15, %v848_v17  ;;  %v858_v20 = vmul.f32 %v1095_v9, %v851_v14 }
 0x829   :  { %v853_v16 = vpop.permute.xlu1 %852 }
 0x82a   :  { %924 = vmatpush1.bf16.msra.mxu0 %v884_v44  ;;  %v859_v26 = vmul.f32 %v1095_v9, %v853_v16 }
 0x82b   :  { %925 = vmatprep.subr.bf16.mxu0 %v1264_v18  ;;  %v861_v27 = vpop.permute.xlu0 %860 }
 0x82c   :  { %v886_v22 = vpack.c.bf16 %v859_v26, %v858_v20  ;;  %v868_v28 = vmul.f32 %v1096_v21, %v861_v27 }
 0x82d   :  { %v863_v8 = vpop.permute.xlu1 %862 }
 0x82e   :  { %926 = vmatpush1.bf16.msra.mxu0 %v885_v19  ;;  %v869_v24 = vmul.f32 %v1096_v21, %v863_v8 }
 0x82f   :  { %927 = vmatprep.subr.bf16.mxu0 %v1264_v18  ;;  %v871_v30 = vpop.permute.xlu0 %870 }
 0x830   :  { %v887_v31 = vpack.c.bf16 %v869_v24, %v868_v28  ;;  %v878_v33 = vmul.f32 %v1097_v29, %v871_v30 }
 0x831   :  { %v873_v25 = vpop.permute.xlu1 %872 }
 0x832   :  { %928 = vmatpush1.bf16.msra.mxu0 %v886_v22  ;;  %v879_v32 = vmul.f32 %v1097_v29, %v873_v25 }
 0x833   :  { %929 = vmatprep.subr.bf16.mxu0 %v1264_v18 }
 0x834   :  { %v888_v34 = vpack.c.bf16 %v879_v32, %v878_v33 }
 0x836   :  { %930 = vmatpush1.bf16.msra.mxu0 %v887_v31 }
 0x837   :  { %931 = vmatprep.subr.bf16.mxu0 %v1264_v18 }
 0x83a   :  { %932 = vmatpush1.bf16.msra.mxu0 %v888_v34 }
 0x83d   :  { %948 = vmatmul.mubr.bf16.vlgmr.msra.gmra.mrb[12].mxu0 %v1259_v35 }
 0x840   :  { %v896_v36 = vpop.permute.xlu0 %895 }
 0x842   :  { %v901_v40 = vpop.permute.xlu1 %900 }
 0x910   :  { %v949_v37 = vpop.f32.mrb[12].mxu0 }
 0x911   :  { %v950_v38 = vadd.f32 %v949_v37, %v896_v36  ;;  %v951_v39 = vpop.f32.mrb[13].mxu0 }
 0x912   :  { %v952_v41 = vpop.f32.mrb[14].mxu0 }
 0x913   :  { %v956_v42 = vmul.f32 0.2, %v950_v38  ;;  %v953_v43 = vadd.f32 %v952_v41, %v901_v40  ;;  %v954_v44 = vpop.f32.mrb[15].mxu0 }
 0x915   :  { %v957_v45 = vmul.f32 0.2, %v953_v43  ;;  %v958_v46 = vmax.f32 %v950_v38, %v956_v42 }
 0x917   :  { %v959_v47 = vmax.f32 %v953_v43, %v957_v45 }
 0x919   :  { %v961_v18 = vpack.c.bf16 %v959_v47, %v958_v46 }
 0x91b   :  { %1214 = vmatpush3.bf16.msra.mxu1 %v961_v18 }
 0x91c   :  { %1219 = vmatprep.subr.bf16.mxu1 %v1262_v0 }
 0x91e   :  { %1216 = vmatmul.mubr.msk.bf16.vlgmr.msra.gmra.mrb[28].mxu1 %vm175_vm4, %v960_v48 }
 0x91f   :  { %1221 = vmatprep.mubr.msk.bf16.mxu1 %vm1263_vm0, %v1262_v0 }
 0x9f1   :  { %v999_v49 = vpop.f32.mrb[28].mxu1 }
 0x9f2   :  { %v1005_v50 = vadd.f32 %v999_v49, %v1492_v23  ;;  %v1217_v51 = vpop.f32.mrb[29].mxu1 }
 0x9f3   :  { %v1002_v52 = vpop.f32.mrb[30].mxu1 }
 0x9f4   :  { %v1007_v53 = vpack.c.bf16 %v1005_v50, %v1005_v50  ;;  %v1218_v54 = vpop.f32.mrb[31].mxu1 }
 0x9f6   :  { %v1012_v55 = vsel %vm751_vm5, %v1007_v53, 0 }
 0x9f7   :  { %1220 = vmatpush3.bf16.msra.mxu1 %v1012_v55 }
 0x9fa   :  { %1222 = vmatmul.mubr.msk.bf16.vlgmr.msra.gmra.mrb[32].mxu1 %vm747_vm6, %v1006_v56 }
 0xacd   :  { %v1048_v57 = vpop.f32.mrb[32].mxu1 }
 0xace   :  { %1054 = vst [vmem:[%s1597_s3] sm:$0x7] %v1048_v57  ;;  %v1223_v0 = vpop.f32.mrb[33].mxu1 }
 0xacf   :  { %v1051_v23 = vpop.f32.mrb[34].mxu1 }
 0xad0   :  { %v1224_v58 = vpop.f32.mrb[35].mxu1 }

</bundles_post_ra>
